<compile_context>
chip_gen: v6e
topology: v6e:2x2x1
jax: 0.10.0
libtpu: 0.0.40
codegen_flags: <defaults>
</compile_context>

<pallas_src>
import jax
import jax.numpy as jnp
from jax import lax
from jax.experimental import pallas as pl
from jax.experimental.pallas import tpu as pltpu

LANE = 128
NEG_INF = -1e30


# ----------------------------- fused kernel --------------------------------

def las_fused_kernel(x_ref,           # (Bt*T, F)   bf16   flattened inputs
                     tgt_ref,         # (Bt*U, 1)   int32  flattened targets
                     lens_ref,        # (Bt, 1, 1)  int32  input lengths
                     tab_ref,         # (Cpad, Ed)  bf16   embedding table
                     enc_w_ref,       # (F, E)      bf16
                     enc_b_ref,       # (1, E)      f32
                     dec_w1_ref,      # (Ed, D)     bf16
                     dec_w2_ref,      # (E, D)      bf16
                     dec_b_ref,       # (1, D)      f32
                     out_w_ref,       # (D, Cpad)   bf16
                     out_b_ref,       # (1, Cpad)   f32 (NEG_INF on padded cols)
                     o_ref):          # (Bt, U, Cpad) f32
    f32, bf16 = jnp.float32, jnp.bfloat16
    bt = o_ref.shape[0]
    u_len = o_ref.shape[1]
    c_pad = o_ref.shape[2]
    t_len = x_ref.shape[0] // bt
    e_dim = enc_w_ref.shape[1]
    ed_dim = tab_ref.shape[1]

    # ---------------- encoder: (Bt*T, F) @ (F, E) + b, tanh ------------------
    enc2 = jnp.tanh(
        jnp.dot(x_ref[...], enc_w_ref[...], preferred_element_type=f32)
        + enc_b_ref[...])                                        # (Bt*T, E) f32
    enc_b3 = enc2.astype(bf16).reshape(bt, t_len, e_dim)         # (Bt, T, E)

    # ------ embedding lookup: lane-dense one-hot @ table (native MXU feed) ---
    class_iota = lax.broadcasted_iota(jnp.int32, (bt * u_len, c_pad), 1)
    onehot = (class_iota == tgt_ref[...]).astype(bf16)           # (Bt*U, Cpad)
    emb2 = jnp.dot(onehot, tab_ref[...],
                   preferred_element_type=f32)                   # (Bt*U, Ed) f32
    emb_bf2 = emb2.astype(bf16)                                  # lossless (table is bf16)
    emb_b3 = emb_bf2.reshape(bt, u_len, ed_dim)                  # (Bt, U, Ed)

    # -------- dot-product attention over encoder time, masked by length ------
    scores = jnp.einsum('bue,bte->but', emb_b3, enc_b3,
                        preferred_element_type=f32)              # (Bt, U, T)
    t_iota = lax.broadcasted_iota(jnp.int32, (bt, u_len, t_len), 2)
    # Note: assumes input_lengths >= 1 (a zero length would average padding).
    scores = jnp.where(t_iota < lens_ref[...], scores, NEG_INF)
    m = jnp.max(scores, axis=-1, keepdims=True)
    p = jnp.exp(scores - m)
    denom = jnp.sum(p, axis=-1, keepdims=True)
    # approx reciprocal (EUP slot) — inference-grade; use exact divide for
    # bit-level parity with a PyTorch reference.
    attn = p * pl.reciprocal(denom, approx=True)                 # (Bt, U, T)
    ctx = jnp.einsum('but,bte->bue', attn.astype(bf16), enc_b3,
                     preferred_element_type=f32)                 # (Bt, U, E)
    ctx2 = ctx.reshape(bt * u_len, e_dim).astype(bf16)           # (Bt*U, E)

    # ---------------- decoder projection: [emb ; ctx] @ W + tanh -------------
    dec2 = jnp.tanh(
        jnp.dot(emb_bf2, dec_w1_ref[...], preferred_element_type=f32)
        + jnp.dot(ctx2, dec_w2_ref[...], preferred_element_type=f32)
        + dec_b_ref[...])                                        # (Bt*U, D) f32

    # ---------------- output linear + exact log_softmax (lane-dense) ---------
    logits = (jnp.dot(dec2.astype(bf16), out_w_ref[...],
                      preferred_element_type=f32)
              + out_b_ref[...])                                  # (Bt*U, Cpad)
    ml = jnp.max(logits, axis=-1, keepdims=True)
    z = logits - ml
    lse = jnp.log(jnp.sum(jnp.exp(z), axis=-1, keepdims=True))
    o_ref[...] = (z - lse).reshape(bt, u_len, c_pad)


# ------------------------------- wrapper ------------------------------------

def las_forward(params, inputs, input_lengths, targets, target_lengths,
                *, batch_tile=None):
    # target_lengths is accepted for API parity with the PyTorch module but is
    # unused by its forward.
    del target_lengths
    B, T, F = inputs.shape
    U = targets.shape[1]
    C, Ed = params["emb_table"].shape
    E = params["enc_w"].shape[1]
    D = params["dec_w1"].shape[1]

    # Batch tile: fold Bt batch rows into every MXU call.  Keep >=2 grid steps
    # so dimension_semantics=("parallel",) can shard over both v7x TensorCores
    # (on v5e/v6e a single TC iterates the grid either way).
    if batch_tile is None:
        batch_tile = B // 2 if (B >= 2 and B % 2 == 0) else 1
    assert B % batch_tile == 0, "batch_tile must divide the batch"
    Bt = batch_tile
    grid = (B // Bt,)

    # Pad the class dimension to a full lane width so logits / log_softmax /
    # the final store are lane-dense; padded classes get a ~-inf bias and the
    # wrapper slices back to C.
    Cpad = max(LANE, ((C + LANE - 1) // LANE) * LANE)

    bf16 = jnp.bfloat16
    tab_p = jnp.zeros((Cpad, Ed), bf16).at[:C].set(params["emb_table"].astype(bf16))
    out_w_p = jnp.zeros((D, Cpad), bf16).at[:, :C].set(params["out_w"].astype(bf16))
    out_b_p = jnp.full((1, Cpad), NEG_INF, jnp.float32).at[:, :C].set(params["out_b"])

    enc_w = params["enc_w"].astype(bf16)
    dec_w1 = params["dec_w1"].astype(bf16)
    dec_w2 = params["dec_w2"].astype(bf16)
    enc_b = params["enc_b"].astype(jnp.float32)
    dec_b = params["dec_b"].astype(jnp.float32)

    x2d = inputs.astype(bf16).reshape(B * T, F)
    tgt2d = targets.astype(jnp.int32).reshape(B * U, 1)
    lens3 = input_lengths.astype(jnp.int32).reshape(B, 1, 1)

    grid_spec = pltpu.PrefetchScalarGridSpec(
        num_scalar_prefetch=0,
        grid=grid,
        in_specs=[
            pl.BlockSpec((Bt * T, F), lambda i: (i, 0)),      # inputs (flat)
            pl.BlockSpec((Bt * U, 1), lambda i: (i, 0)),      # targets (flat)
            pl.BlockSpec((Bt, 1, 1), lambda i: (i, 0, 0)),    # input lengths
            pl.BlockSpec((Cpad, Ed), lambda i: (0, 0)),       # emb table
            pl.BlockSpec((F, E), lambda i: (0, 0)),           # enc_w
            pl.BlockSpec((1, E), lambda i: (0, 0)),           # enc_b
            pl.BlockSpec((Ed, D), lambda i: (0, 0)),          # dec_w1
            pl.BlockSpec((E, D), lambda i: (0, 0)),           # dec_w2
            pl.BlockSpec((1, D), lambda i: (0, 0)),           # dec_b
            pl.BlockSpec((D, Cpad), lambda i: (0, 0)),        # out_w
            pl.BlockSpec((1, Cpad), lambda i: (0, 0)),        # out_b
        ],
        out_specs=pl.BlockSpec((Bt, U, Cpad), lambda i: (i, 0, 0)),
    )

    # Advisory cost for the XLA scheduler (matmul dominated).
    flops = 2 * (B * T * F * E                 # encoder
                 + B * U * Cpad * Ed           # one-hot embedding
                 + 2 * B * U * T * E           # attention scores + context
                 + B * U * (Ed + E) * D        # decoder projection
                 + B * U * D * Cpad)           # output linear
    transcendentals = B * T * E + B * U * D + B * U * T + B * U * Cpad
    bytes_accessed = (x2d.size * 2 + tgt2d.size * 4 + lens3.size * 4
                      + tab_p.size * 2 + enc_w.size * 2 + dec_w1.size * 2
                      + dec_w2.size * 2 + out_w_p.size * 2
                      + (enc_b.size + dec_b.size + out_b_p.size) * 4
                      + B * U * Cpad * 4)
    cost = pl.CostEstimate(flops=flops, transcendentals=transcendentals,
                           bytes_accessed=bytes_accessed)

    out_padded = pl.pallas_call(
        las_fused_kernel,
        out_shape=jax.ShapeDtypeStruct((B, U, Cpad), jnp.float32),
        grid_spec=grid_spec,
        compiler_params=pltpu.CompilerParams(
            dimension_semantics=("parallel",)),   # batch-tile axis -> both v7x TCs
        cost_estimate=cost,
    )(x2d, tgt2d, lens3, tab_p,
      enc_w, enc_b, dec_w1, dec_w2, dec_b, out_w_p, out_b_p)

    return out_padded[:, :, :C]


def init_params(key, F, E, Ed, D, n_class):
    ks = jax.random.split(key, 6)
    s = lambda k, shape, scale: (scale * jax.random.normal(k, shape)).astype(jnp.float32)
    return {
        "enc_w": s(ks[0], (F, E), 0.1),
        "enc_b": jnp.zeros((1, E), jnp.float32),
        "emb_table": s(ks[1], (n_class, Ed), 0.1),
        "dec_w1": s(ks[2], (Ed, D), 0.1),
        "dec_w2": s(ks[3], (E, D), 0.1),
        "dec_b": jnp.zeros((1, D), jnp.float32),
        "out_w": s(ks[4], (D, n_class), 0.1),
        "out_b": s(ks[5], (1, n_class), 0.01),
    }


if __name__ == "__main__":
    B, T, F = 4, 16, 32        # batch, input time, input feature dim
    U = 8                      # target sequence length
    E = Ed = D = 128           # lane-width hidden dims (full 128-lane vregs)
    n_class = 40

    key = jax.random.PRNGKey(0)
    k_in, k_tg, k_p = jax.random.split(key, 3)
    inputs = jax.random.normal(k_in, (B, T, F), dtype=jnp.float32)
    input_lengths = jnp.array([T, T - 2, T - 5, T], dtype=jnp.int32)
    targets = jax.random.randint(k_tg, (B, U), 0, n_class, dtype=jnp.int32)
    target_lengths = jnp.array([U, U - 1, U, U - 3], dtype=jnp.int32)

    params = init_params(k_p, F, E, Ed, D, n_class)

    outputs = las_forward(params, inputs, input_lengths, targets, target_lengths)
    jax.block_until_ready(outputs)

    assert outputs.shape == (B, U, n_class)
    # log_softmax rows must sum (in prob space) to ~1
    assert bool(jnp.allclose(jnp.sum(jnp.exp(outputs), axis=-1), 1.0, atol=1e-3))
    print("KERNEL_OK")
</pallas_src>

<mosaic_0001>
module attributes {stable_mosaic.version = 11 : i64} {
  func.func @las_fused_kernel(%arg0: i32, %arg1: memref<32x32xbf16, #tpu.memory_space<vmem>>, %arg2: memref<16x1xi32, #tpu.memory_space<vmem>>, %arg3: memref<2x1x1xi32, #tpu.memory_space<vmem>>, %arg4: memref<128x128xbf16, #tpu.memory_space<vmem>>, %arg5: memref<32x128xbf16, #tpu.memory_space<vmem>>, %arg6: memref<1x128xf32, #tpu.memory_space<vmem>>, %arg7: memref<128x128xbf16, #tpu.memory_space<vmem>>, %arg8: memref<128x128xbf16, #tpu.memory_space<vmem>>, %arg9: memref<1x128xf32, #tpu.memory_space<vmem>>, %arg10: memref<128x128xbf16, #tpu.memory_space<vmem>>, %arg11: memref<1x128xf32, #tpu.memory_space<vmem>>, %arg12: memref<2x8x128xf32, #tpu.memory_space<vmem>>) attributes {dimension_semantics = [#tpu.dimension_semantics<parallel>], iteration_bounds = array<i64: 2>, scalar_prefetch = 0 : i64, scratch_operands = 0 : i64, tpu.core_type = #tpu.core_type<tc>, window_params = [{transform_indices = @transform_0, window_bounds = array<i64: 32, 32>}, {transform_indices = @transform_1, window_bounds = array<i64: 16, 1>}, {transform_indices = @transform_2, window_bounds = array<i64: 2, 1, 1>}, {pipeline_mode = #tpu.pipeline_mode<synchronous>, transform_indices = @transform_3, window_bounds = array<i64: 128, 128>}, {pipeline_mode = #tpu.pipeline_mode<synchronous>, transform_indices = @transform_4, window_bounds = array<i64: 32, 128>}, {pipeline_mode = #tpu.pipeline_mode<synchronous>, transform_indices = @transform_5, window_bounds = array<i64: 1, 128>}, {pipeline_mode = #tpu.pipeline_mode<synchronous>, transform_indices = @transform_6, window_bounds = array<i64: 128, 128>}, {pipeline_mode = #tpu.pipeline_mode<synchronous>, transform_indices = @transform_7, window_bounds = array<i64: 128, 128>}, {pipeline_mode = #tpu.pipeline_mode<synchronous>, transform_indices = @transform_8, window_bounds = array<i64: 1, 128>}, {pipeline_mode = #tpu.pipeline_mode<synchronous>, transform_indices = @transform_9, window_bounds = array<i64: 128, 128>}, {pipeline_mode = #tpu.pipeline_mode<synchronous>, transform_indices = @transform_10, window_bounds = array<i64: 1, 128>}, {transform_indices = @transform_11, window_bounds = array<i64: 2, 8, 128>}]} {
    %c0 = arith.constant 0 : index
    %c0_0 = arith.constant 0 : index
    %0 = vector.load %arg1[%c0, %c0_0] : memref<32x32xbf16, #tpu.memory_space<vmem>>, vector<32x32xbf16>
    %c0_1 = arith.constant 0 : index
    %c0_2 = arith.constant 0 : index
    %1 = vector.load %arg5[%c0_1, %c0_2] : memref<32x128xbf16, #tpu.memory_space<vmem>>, vector<32x128xbf16>
    %cst = arith.constant dense<0.000000e+00> : vector<32x128xf32>
    %2 = tpu.matmul %0, %1, %cst {dimension_numbers = #tpu.dot_dimension_numbers<[1], [0], [0], [1], [0, 0, 1, 1], [], []>} : vector<32x32xbf16>, vector<32x128xbf16>, vector<32x128xf32> -> vector<32x128xf32>
    %c0_3 = arith.constant 0 : index
    %c0_4 = arith.constant 0 : index
    %3 = vector.load %arg6[%c0_3, %c0_4] : memref<1x128xf32, #tpu.memory_space<vmem>>, vector<1x128xf32>
    %4 = vector.broadcast %3 : vector<1x128xf32> to vector<32x128xf32>
    %5 = arith.addf %2, %4 : vector<32x128xf32>
    %6 = math.tanh %5 : vector<32x128xf32>
    %7 = arith.truncf %6 : vector<32x128xf32> to vector<32x128xbf16>
    %8 = vector.shape_cast %7 : vector<32x128xbf16> to vector<2x16x128xbf16>
    %9 = tpu.iota {dimensions = array<i32: 1>} : vector<16x128xi32>
    %c0_5 = arith.constant 0 : index
    %c0_6 = arith.constant 0 : index
    %10 = vector.load %arg2[%c0_5, %c0_6] : memref<16x1xi32, #tpu.memory_space<vmem>>, vector<16x1xi32>
    %11 = vector.broadcast %10 : vector<16x1xi32> to vector<16x128xi32>
    %12 = arith.cmpi eq, %9, %11 : vector<16x128xi32>
    %13 = arith.extui %12 : vector<16x128xi1> to vector<16x128xi32>
    %14 = arith.sitofp %13 : vector<16x128xi32> to vector<16x128xf32>
    %15 = arith.truncf %14 : vector<16x128xf32> to vector<16x128xbf16>
    %c0_7 = arith.constant 0 : index
    %c0_8 = arith.constant 0 : index
    %16 = vector.load %arg4[%c0_7, %c0_8] : memref<128x128xbf16, #tpu.memory_space<vmem>>, vector<128x128xbf16>
    %cst_9 = arith.constant dense<0.000000e+00> : vector<16x128xf32>
    %17 = tpu.matmul %15, %16, %cst_9 {dimension_numbers = #tpu.dot_dimension_numbers<[1], [0], [0], [1], [0, 0, 1, 1], [], []>} : vector<16x128xbf16>, vector<128x128xbf16>, vector<16x128xf32> -> vector<16x128xf32>
    %18 = arith.truncf %17 : vector<16x128xf32> to vector<16x128xbf16>
    %19 = vector.shape_cast %18 : vector<16x128xbf16> to vector<2x8x128xbf16>
    "tpu.trace_start"() <{level = 10 : i32, message = "bue,bte->but"}> : () -> ()
    %cst_10 = arith.constant dense<0.000000e+00> : vector<2x8x16xf32>
    %20 = tpu.matmul %19, %8, %cst_10 {dimension_numbers = #tpu.dot_dimension_numbers<[2], [2], [1], [1], [0, 0, 0, 1, 1, 1], [0], [0]>} : vector<2x8x128xbf16>, vector<2x16x128xbf16>, vector<2x8x16xf32> -> vector<2x8x16xf32>
    "tpu.trace_stop"() : () -> ()
    %21 = tpu.iota {dimensions = array<i32: 2>} : vector<2x8x16xi32>
    %c0_11 = arith.constant 0 : index
    %c0_12 = arith.constant 0 : index
    %c0_13 = arith.constant 0 : index
    %22 = vector.load %arg3[%c0_11, %c0_12, %c0_13] : memref<2x1x1xi32, #tpu.memory_space<vmem>>, vector<2x1x1xi32>
    %23 = vector.broadcast %22 : vector<2x1x1xi32> to vector<2x8x16xi32>
    %24 = arith.cmpi slt, %21, %23 : vector<2x8x16xi32>
    %cst_14 = arith.constant -1.000000e+30 : f32
    %25 = vector.broadcast %cst_14 : f32 to vector<2x8x16xf32>
    %26 = arith.select %24, %20, %25 : vector<2x8x16xi1>, vector<2x8x16xf32>
    %cst_15 = arith.constant dense<0xFF800000> : vector<2x8xf32>
    %27 = vector.multi_reduction <maximumf>, %26, %cst_15 [2] : vector<2x8x16xf32> to vector<2x8xf32>
    %28 = vector.shape_cast %27 : vector<2x8xf32> to vector<2x8x1xf32>
    %29 = vector.broadcast %28 : vector<2x8x1xf32> to vector<2x8x16xf32>
    %30 = arith.subf %26, %29 : vector<2x8x16xf32>
    %31 = math.exp %30 : vector<2x8x16xf32>
    %cst_16 = arith.constant dense<0.000000e+00> : vector<2x8xf32>
    %32 = vector.multi_reduction <add>, %31, %cst_16 [2] : vector<2x8x16xf32> to vector<2x8xf32>
    %33 = vector.shape_cast %32 : vector<2x8xf32> to vector<2x8x1xf32>
    %34 = tpu.reciprocal %33 {approx = true} : vector<2x8x1xf32> -> vector<2x8x1xf32>
    %35 = vector.broadcast %34 : vector<2x8x1xf32> to vector<2x8x16xf32>
    %36 = arith.mulf %31, %35 : vector<2x8x16xf32>
    %37 = arith.truncf %36 : vector<2x8x16xf32> to vector<2x8x16xbf16>
    "tpu.trace_start"() <{level = 10 : i32, message = "but,bte->bue"}> : () -> ()
    %cst_17 = arith.constant dense<0.000000e+00> : vector<2x8x128xf32>
    %38 = tpu.matmul %37, %8, %cst_17 {dimension_numbers = #tpu.dot_dimension_numbers<[2], [1], [1], [2], [0, 0, 0, 1, 1, 2], [0], [0]>} : vector<2x8x16xbf16>, vector<2x16x128xbf16>, vector<2x8x128xf32> -> vector<2x8x128xf32>
    "tpu.trace_stop"() : () -> ()
    %39 = vector.shape_cast %38 : vector<2x8x128xf32> to vector<16x128xf32>
    %40 = arith.truncf %39 : vector<16x128xf32> to vector<16x128xbf16>
    %c0_18 = arith.constant 0 : index
    %c0_19 = arith.constant 0 : index
    %41 = vector.load %arg7[%c0_18, %c0_19] : memref<128x128xbf16, #tpu.memory_space<vmem>>, vector<128x128xbf16>
    %cst_20 = arith.constant dense<0.000000e+00> : vector<16x128xf32>
    %42 = tpu.matmul %18, %41, %cst_20 {dimension_numbers = #tpu.dot_dimension_numbers<[1], [0], [0], [1], [0, 0, 1, 1], [], []>} : vector<16x128xbf16>, vector<128x128xbf16>, vector<16x128xf32> -> vector<16x128xf32>
    %c0_21 = arith.constant 0 : index
    %c0_22 = arith.constant 0 : index
    %43 = vector.load %arg8[%c0_21, %c0_22] : memref<128x128xbf16, #tpu.memory_space<vmem>>, vector<128x128xbf16>
    %cst_23 = arith.constant dense<0.000000e+00> : vector<16x128xf32>
    %44 = tpu.matmul %40, %43, %cst_23 {dimension_numbers = #tpu.dot_dimension_numbers<[1], [0], [0], [1], [0, 0, 1, 1], [], []>} : vector<16x128xbf16>, vector<128x128xbf16>, vector<16x128xf32> -> vector<16x128xf32>
    %45 = arith.addf %42, %44 : vector<16x128xf32>
    %c0_24 = arith.constant 0 : index
    %c0_25 = arith.constant 0 : index
    %46 = vector.load %arg9[%c0_24, %c0_25] : memref<1x128xf32, #tpu.memory_space<vmem>>, vector<1x128xf32>
    %47 = vector.broadcast %46 : vector<1x128xf32> to vector<16x128xf32>
    %48 = arith.addf %45, %47 : vector<16x128xf32>
    %49 = math.tanh %48 : vector<16x128xf32>
    %50 = arith.truncf %49 : vector<16x128xf32> to vector<16x128xbf16>
    %c0_26 = arith.constant 0 : index
    %c0_27 = arith.constant 0 : index
    %51 = vector.load %arg10[%c0_26, %c0_27] : memref<128x128xbf16, #tpu.memory_space<vmem>>, vector<128x128xbf16>
    %cst_28 = arith.constant dense<0.000000e+00> : vector<16x128xf32>
    %52 = tpu.matmul %50, %51, %cst_28 {dimension_numbers = #tpu.dot_dimension_numbers<[1], [0], [0], [1], [0, 0, 1, 1], [], []>} : vector<16x128xbf16>, vector<128x128xbf16>, vector<16x128xf32> -> vector<16x128xf32>
    %c0_29 = arith.constant 0 : index
    %c0_30 = arith.constant 0 : index
    %53 = vector.load %arg11[%c0_29, %c0_30] : memref<1x128xf32, #tpu.memory_space<vmem>>, vector<1x128xf32>
    %54 = vector.broadcast %53 : vector<1x128xf32> to vector<16x128xf32>
    %55 = arith.addf %52, %54 : vector<16x128xf32>
    %cst_31 = arith.constant dense<0xFF800000> : vector<16xf32>
    %56 = vector.multi_reduction <maximumf>, %55, %cst_31 [1] : vector<16x128xf32> to vector<16xf32>
    %57 = vector.shape_cast %56 : vector<16xf32> to vector<16x1xf32>
    %58 = vector.broadcast %57 : vector<16x1xf32> to vector<16x128xf32>
    %59 = arith.subf %55, %58 : vector<16x128xf32>
    %60 = math.exp %59 : vector<16x128xf32>
    %cst_32 = arith.constant dense<0.000000e+00> : vector<16xf32>
    %61 = vector.multi_reduction <add>, %60, %cst_32 [1] : vector<16x128xf32> to vector<16xf32>
    %62 = vector.shape_cast %61 : vector<16xf32> to vector<16x1xf32>
    %63 = math.log %62 : vector<16x1xf32>
    %64 = vector.broadcast %63 : vector<16x1xf32> to vector<16x128xf32>
    %65 = arith.subf %59, %64 : vector<16x128xf32>
    %66 = vector.shape_cast %65 : vector<16x128xf32> to vector<2x8x128xf32>
    %c0_33 = arith.constant 0 : index
    %c0_34 = arith.constant 0 : index
    %c0_35 = arith.constant 0 : index
    %67 = vector.load %arg12[%c0_33, %c0_34, %c0_35] : memref<2x8x128xf32, #tpu.memory_space<vmem>>, vector<2x8x128xf32>
    tpu.vector_store %arg12[%c0_33, %c0_34, %c0_35], %66 {strides = array<i32>} : memref<2x8x128xf32, #tpu.memory_space<vmem>>, vector<2x8x128xf32>,
    return
  }
  func.func @transform_0(%arg0: i32) -> (i32, i32) {
    %c0_i32 = arith.constant 0 : i32
    %c0_i32_0 = arith.constant 0 : i32
    return %arg0, %c0_i32 : i32, i32
  }
  func.func @transform_1(%arg0: i32) -> (i32, i32) {
    %c0_i32 = arith.constant 0 : i32
    %c0_i32_0 = arith.constant 0 : i32
    return %arg0, %c0_i32 : i32, i32
  }
  func.func @transform_2(%arg0: i32) -> (i32, i32, i32) {
    %c0_i32 = arith.constant 0 : i32
    %c0_i32_0 = arith.constant 0 : i32
    %c0_i32_1 = arith.constant 0 : i32
    return %arg0, %c0_i32, %c0_i32_0 : i32, i32, i32
  }
  func.func @transform_3(%arg0: i32) -> (i32, i32) {
    %c0_i32 = arith.constant 0 : i32
    %c0_i32_0 = arith.constant 0 : i32
    %c0_i32_1 = arith.constant 0 : i32
    return %c0_i32, %c0_i32_0 : i32, i32
  }
  func.func @transform_4(%arg0: i32) -> (i32, i32) {
    %c0_i32 = arith.constant 0 : i32
    %c0_i32_0 = arith.constant 0 : i32
    %c0_i32_1 = arith.constant 0 : i32
    return %c0_i32, %c0_i32_0 : i32, i32
  }
  func.func @transform_5(%arg0: i32) -> (i32, i32) {
    %c0_i32 = arith.constant 0 : i32
    %c0_i32_0 = arith.constant 0 : i32
    %c0_i32_1 = arith.constant 0 : i32
    return %c0_i32, %c0_i32_0 : i32, i32
  }
  func.func @transform_6(%arg0: i32) -> (i32, i32) {
    %c0_i32 = arith.constant 0 : i32
    %c0_i32_0 = arith.constant 0 : i32
    %c0_i32_1 = arith.constant 0 : i32
    return %c0_i32, %c0_i32_0 : i32, i32
  }
  func.func @transform_7(%arg0: i32) -> (i32, i32) {
    %c0_i32 = arith.constant 0 : i32
    %c0_i32_0 = arith.constant 0 : i32
    %c0_i32_1 = arith.constant 0 : i32
    return %c0_i32, %c0_i32_0 : i32, i32
  }
  func.func @transform_8(%arg0: i32) -> (i32, i32) {
    %c0_i32 = arith.constant 0 : i32
    %c0_i32_0 = arith.constant 0 : i32
    %c0_i32_1 = arith.constant 0 : i32
    return %c0_i32, %c0_i32_0 : i32, i32
  }
  func.func @transform_9(%arg0: i32) -> (i32, i32) {
    %c0_i32 = arith.constant 0 : i32
    %c0_i32_0 = arith.constant 0 : i32
    %c0_i32_1 = arith.constant 0 : i32
    return %c0_i32, %c0_i32_0 : i32, i32
  }
  func.func @transform_10(%arg0: i32) -> (i32, i32) {
    %c0_i32 = arith.constant 0 : i32
    %c0_i32_0 = arith.constant 0 : i32
    %c0_i32_1 = arith.constant 0 : i32
    return %c0_i32, %c0_i32_0 : i32, i32
  }
  func.func @transform_11(%arg0: i32) -> (i32, i32, i32) {
    %c0_i32 = arith.constant 0 : i32
    %c0_i32_0 = arith.constant 0 : i32
    %c0_i32_1 = arith.constant 0 : i32
    return %arg0, %c0_i32, %c0_i32_0 : i32, i32, i32
  }
}

</mosaic_0001>

<bundles_post_ra>
// kernel: tpu_custom_call.1
= control target key start
LH: loop header
LB: loop body
LE: loop exit
PB: predicated region body
PF: predicated region fallthrough
CT: control target
= control target key end

     0   :  { %s2279_s0 = inlined_call_operand.vmem [shape: bf16[64,32], index: 0, kind: input, shape index: {}]   ;;  %s2280_s1 = inlined_call_operand.vmem [shape: s32[32,1], index: 1, kind: input, shape index: {}]   ;;  %s2281_s2 = inlined_call_operand.vmem [shape: s32[4,1,1], index: 2, kind: input, shape index: {}]   ;;  %s2282_s3 = inlined_call_operand.vmem [shape: bf16[128,128], index: 3, kind: input, shape index: {}]   ;;  %s2283_s4 = inlined_call_operand.vmem [shape: bf16[32,128], index: 4, kind: input, shape index: {}]   ;;  %s2284_s5 = inlined_call_operand.vmem [shape: f32[1,128], index: 5, kind: input, shape index: {}]   ;;  %s2285_s6 = inlined_call_operand.hbm [shape: bf16[128,128], index: 6, kind: input, shape index: {}]   ;;  %s2286_s7 = inlined_call_operand.hbm [shape: bf16[128,128], index: 7, kind: input, shape index: {}]   ;;  %s2287_s8 = inlined_call_operand.vmem [shape: f32[1,128], index: 8, kind: input, shape index: {}]   ;;  %s2288_s9 = inlined_call_operand.hbm [shape: bf16[128,128], index: 9, kind: input, shape index: {}]   ;;  %s2289_s10 = inlined_call_operand.vmem [shape: f32[1,128], index: 10, kind: input, shape index: {}]   ;;  %s2290_s11 = inlined_call_operand.hbm [shape: f32[4,8,128], index: 11, kind: output, shape index: {}]  }
   0x1   :  { %2294 = sst [smem:[#allocation14_spill]] %s2285_s6 }
   0x2   :  { %2295 = sst [smem:[#allocation15_spill]] %s2286_s7 }
   0x3   :  { %16 = vsyncpa [#allocation3], 0 }
   0x4   :  { %17 = vsyncpa [#allocation6], 0 }
   0x5   :  { %18 = vsyncpa [#allocation4], 0 }
   0x6   :  { %20 = vsyncpa [#allocation4 + $0x1], 0  ;;  %s1998_s17 = smov 0   ;;  %s2000_s18 = smov 0  }
   0x7   :  { %s2002_s19 = smov 0   ;;  %s2004_s20 = smov 0  }
   0x8 LB: > { %2296 = sst [smem:[#allocation12_spill]] %s1920_s19  ;;  %s2019_s21 = sadd.s32 4294967295, %s1924_s20   ;;  %s1924_s20 = sphi %s2004_s20, %s2315_s20   ;;  %s1920_s19 = sphi %s2002_s19, %s2314_s19   ;;  %s1916_s18 = sphi %s2000_s18, %s2313_s18   ;;  %s1912_s17 = sphi %s1998_s17, %s2312_s17  }
   0x9   : > { %s1399_s22 = sadd.s32 4294967294, %s1924_s20   ;;  %s2023_s23 = sadd.s32 1, %s1924_s20  }
   0xa   : > { %s279_s24 = sadd.s32 1, %s1920_s19  ;;  %s276_s25 = ssub.s32 %s1924_s20, %s2023_s23 }
   0xb   : > { %p289_p0 = scmp.ne.s32.totalorder %s1920_s19, %s1916_s18  ;;  %p277_p1 = scmp.eq.s32.totalorder %s276_s25, 0 }
   0xc   : > { %p290_p2 = scmp.eq.s32.totalorder %s2019_s21, 1  ;;  %p295_p3 = scmp.ne.s32.totalorder %s1916_s18, %s1912_s17 }
   0xd   : > { %p296_p4 = scmp.eq.s32.totalorder %s1399_s22, 1  ;;  %p1400_p7 = scmp.ge.s32.totalorder %s1924_s20, 1 }
   0xe   : > { %s2034_s26 = scalar_select %p277_p1, %s1920_s19, %s279_s24  }
   0xf   : > { %p2036_p5 = por %p290_p2, %p289_p0  ;;  %p2040_p6 = por %p296_p4, %p295_p3 }
  0x10   : > { %2297 = sst [smem:[#allocation13_spill]] %s2034_s26  ;;  %p303_p8 = scmp.lt.s32.totalorder %s1924_s20, 3 }
  0x11   : > { %s2298_s27 = scalar_select %p2036_p5, 1, 0 }
  0x12   : > { %s2299_s28 = scalar_select %p2040_p6, 1, 0 }
  0x13   : > { %p2291_p9 = scmp.eq.s32.totalorder %s2019_s21, 0  ;;  %p2047_p10 = pnand %p1400_p7, %p303_p8 }
  0x14   : > { %s1926_s30 = smov [#allocation5]   ;;  %s1927_s14 = smov [#allocation2]  }
  0x15   : > { %p1648_p11 = pneg %p2047_p10  ;;  %s337_s12 = sshll.u32 %s1926_s30, 4  ;;  %s338_s12 = int_to_ptr.vmem [resolvable:$true] %s337_s12 }
  0x16   : > { %s324_s15 = sshll.u32 %s1927_s14, 4  ;;  %s1928_s16 = smov [#allocation7]   ;;  %s325_s15 = int_to_ptr.vmem [resolvable:$true] %s324_s15 }
  0x17   : > { %p2055_p12 = pnand %p2291_p9, %p1648_p11  ;;  %s353_s22 = sshll.u32 %s1928_s16, 4  ;;  %s354_s22 = int_to_ptr.vmem [resolvable:$true] %s353_s22 }
  0x18   : > { %s1789_s24 = scalar_lea.vmem %s338_s12, 1024  ;;  %p1797_p3 = scmp.lt.s32.totalorder %s338_s12, %s338_s12 }
  0x19   : > { %p1780_p13 = pneg %p2055_p12  ;;  %p1790_p0 = scmp.ne.s32.totalorder %s338_s12, %s1789_s24 }
  0x1a   : > { %p1798_p4 = scmp.lt.s32.totalorder %s1789_s24, %s1789_s24 }
  0x1b   : > { %p1792_p1 = pnand %p1790_p0, %p1780_p13 }
  0x1c   : > { %p1799_p7 = por %p1798_p4, %p1797_p3 }
  0x1d   : > { %p1793_p2 = pneg %p1792_p1 }
  0x1f   : > { %p1800_p8 = pnand %p1799_p7, %p1793_p2 }
  0x21   : > { %1803 = shalt.err (!%p1800_p8)
}
  0x22   : > { %s1929_s25 = smov 64   ;;  %s1930_s30 = smov 4  }
  0x23   : > { %s2302_s7 = sld [smem:[#allocation15_spill]]  ;;  %s1815_s26 = scalar_lea.vmem %s325_s15, 1024 }
  0x24   : > { %p1816_p11 = scmp.ne.s32.totalorder %s325_s15, %s1815_s26  ;;  %p1823_p9 = scmp.lt.s32.totalorder %s325_s15, %s325_s15 }
  0x25   : > { %p1824_p6 = scmp.lt.s32.totalorder %s1815_s26, %s1815_s26 }
  0x26   : > { %p1818_p0 = pnand %p1816_p11, %p1780_p13 }
  0x27   : > { %p1825_p3 = por %p1824_p6, %p1823_p9 }
  0x28   : > { %p1819_p1 = pneg %p1818_p0 }
  0x29   : > { %1654 = dma.hbm_to_vmem [thread:$0]  (!%p2055_p12), %s2302_s7, 1024, %s338_s12, [#allocation6], %s1929_s25, %s1929_s25, %s1930_s30  }
  0x2a   : > { %p1826_p2 = pnand %p1825_p3, %p1819_p1 }
  0x2c   : > { %1829 = shalt.err (!%p1826_p2)
}
  0x2d   : > { %s2303_s6 = sld [smem:[#allocation14_spill]]  ;;  %s1841_s12 = scalar_lea.vmem %s354_s22, 1024 }
  0x2e   : > { %p1842_p4 = scmp.ne.s32.totalorder %s354_s22, %s1841_s12  ;;  %p1849_p11 = scmp.lt.s32.totalorder %s354_s22, %s354_s22 }
  0x2f   : > { %p1850_p0 = scmp.lt.s32.totalorder %s1841_s12, %s1841_s12 }
  0x30   : > { %p1844_p7 = pnand %p1842_p4, %p1780_p13 }
  0x31   : > { %p1851_p5 = por %p1850_p0, %p1849_p11 }
  0x32   : > { %p1845_p8 = pneg %p1844_p7 }
  0x33   : > { %1651 = dma.hbm_to_vmem [thread:$0]  (!%p2055_p12), %s2303_s6, 1024, %s325_s15, [#allocation3], %s1929_s25, %s1929_s25, %s1930_s30  }
  0x34   : > { %p1852_p6 = pnand %p1851_p5, %p1845_p8 }
  0x36   : > { %1855 = shalt.err (!%p1852_p6)
}
  0x37   : > { %1657 = dma.hbm_to_vmem [thread:$0]  (!%p2055_p12), %s2288_s9, 1024, %s354_s22, [#allocation6], %s1929_s25, %s1929_s25, %s1930_s30  }
  0x38   : > { %398 = sbr.rel (%p2047_p10) target bundleno = 1850 (0x73a), region = 64  ;;  %p2304_p9 = scmp.eq.s32.totalorder (!%p2047_p10), %s2019_s21, 0 }
  0x3d   : > { %1899 = dma.done.wait (%p2304_p9), [#allocation3], 1024   ;;  %p2305_p13 = pmov %p2304_p9 }
  0x3e   : > { %p2306_p1 = pmov %p2304_p9 }
  0x3f   : > { %1901 = vsyncadd (%p2305_p13), [#allocation3], 4294966272 }
  0x40   : > { %1903 = dma.done.wait (%p2306_p1), [#allocation6], 2048   ;;  %p2307_p5 = pmov %p2306_p1 }
  0x41   : > { %s1412_s19 = sshll.u32 %s2019_s21, 1  ;;  %s1410_s13 = sshll.u32 %s2019_s21, 2  ;;  %v1931_v0 = vmov 0   ;;  %v1932_v1 = vmov 0.0   ;;  %v1714_v4 = vld [vmem:[%s2283_s4 + $0x8] sm:$0xff]   ;;  %v1715_v5 = vld [vmem:[%s2283_s4] sm:$0xff]   ;;  %v573_v16 = vlaneseq }
  0x42   : > { %1905 = vsyncadd (%p2307_p5), [#allocation6], 4294965248  ;;  %1712 = vset.pattern.permute.xlu0 %v1931_v0  ;;  %p462_p12 = scmp.lt.s32.totalorder %s1412_s19, 3  ;;  %p456_p10 = scmp.lt.s32.totalorder %s1410_s13, 7  ;;  %1713 = vset.pattern.permute.xlu1 %v1931_v0  ;;  %vm1933_vm0 = vmmov 0   ;;  %vm511_vm1 = vcmask 261120  }
  0x43   : > { %1530 = vmatprep.subr.bf16.mxu1 %v1932_v1  ;;  %1546 = vmatprep.mubr.msk.bf16.mxu1 %vm1933_vm0, %v1932_v1  ;;  %v1718_v7 = vld [vmem:[%s2282_s3 + $0x38] sm:$0xff]   ;;  %v1719_v9 = vld [vmem:[%s2282_s3 + $0x30] sm:$0xff]   ;;  %v1720_v10 = vld [vmem:[%s2282_s3 + $0x28] sm:$0xff]   ;;  %v2150_v18 = vand.u32 127, %v573_v16  ;;  %v1934_v20 = vmov 1.0|1.0  }
  0x44   : > { %s2317_s19 = smov (!%p462_p12, %s1412_s19), 3  ;;  %s2319_s13 = smov (!%p456_p10, %s1410_s13), 7  ;;  %1522 = vmatprep.subr.bf16.mxu0 %v1714_v4  ;;  %1531 = vmatpush3.bf16.msra.mxu1 %v1718_v7  ;;  %v1721_v11 = vld [vmem:[%s2282_s3 + $0x20] sm:$0xff]   ;;  %v1722_v12 = vld [vmem:[%s2282_s3 + $0x18] sm:$0xff]   ;;  %v1723_v13 = vld [vmem:[%s2282_s3 + $0x10] sm:$0xff]   ;;  %vm803_vm6 = vcmask 130048  }
  0x45   : > { %s1413_s29 = sshll.u32 %s2317_s19, 3  ;;  %s1411_s30 = sshll.u32 %s2319_s13, 2  ;;  %1523 = vmatpush3.bf16.msra.mxu0 %v1714_v4  ;;  %1532 = vmatprep.subr.bf16.mxu1 %v1932_v1  ;;  %v1724_v14 = vld [vmem:[%s2282_s3 + $0x8] sm:$0xff]   ;;  %v1725_v15 = vld [vmem:[%s2282_s3] sm:$0xff]   ;;  %v1735_v7 = vld [vmem:[#allocation5 + $0x30] sm:$0xff]  }
  0x46   : > { %s465_s25 = scalar_lea.vmem %s2280_s1, %s1413_s29  ;;  %s459_s12 = scalar_lea.vmem %s2279_s0, %s1411_s30  ;;  %1524 = vmatprep.subr.bf16.mxu0 %v1715_v5  ;;  %v1415_v21 = vld [vmem:[%s2284_s5] ss:$0 sm:$0xff] }
  0x47   : > { %v575_v2 = vld [vmem:[%s465_s25] sm:$0xff]  ;;  %v576_v3 = vld [vmem:[%s465_s25 + $0x8] sm:$0xff]  ;;  %s470_s30 = scalar_lea.vmem %s2281_s2, %s2317_s19  ;;  %s452_s26 = sand.u32 1, %s1916_s18  }
  0x48   : > { %578 = vperm.xlu0 %1712, %v575_v2   ;;  %v1716_v6 = vld [vmem:[%s459_s12] sm:$0xff]   ;;  %v1717_v8 = vld [vmem:[%s459_s12 + $0x8] sm:$0xff]   ;;  %1533 = vmatpush3.bf16.msra.mxu1 %v1719_v9  ;;  %s1409_s14 = sshll.u32 %s452_s26, 4  ;;  %s1473_s15 = sshll.u32 %s2019_s21, 8 }
  0x49   : > { %1526 = vmatprep.mubr.msk.bf16.mxu0 %vm511_vm1, %v1716_v6  ;;  %1525 = vmatpush3.bf16.msra.mxu0 %v1715_v5  ;;  %v1436_v28 = vld [vmem:[%s470_s30] ss:$0 sm:$0xff]  ;;  %v1437_v31 = vld [vmem:[%s470_s30 + $0x1] ss:$0 sm:$0xff]  ;;  %v1734_v6 = vld [vmem:[#allocation5 + $0x38] sm:$0xff]   ;;  %s454_s13 = scalar_lea.vmem [#allocation8], %s1409_s14  ;;  %s2237_s22 = scalar_lea.hbm %s2290_s11, %s1473_s15 }
  0x4a   : > { %1550 = vmatprep.subr.bf16.mxu0 %v1932_v1  ;;  %1534 = vmatprep.subr.bf16.mxu1 %v1932_v1  ;;  %v1737_v9 = vld [vmem:[#allocation5 + $0x20] sm:$0xff]   ;;  %s1285_s29 = sshll.u32 %s454_s13, 4  ;;  %s2239_s25 = scalar_lea.sflag [#allocation4], %s452_s26  ;;  %s2232_s29 = int_to_ptr.vmem [resolvable:$true] %s1285_s29 }
  0x4b   : > { %794 = vperm.xlu1 %1713, %v1436_v28   ;;  %v1740_v28 = vld [vmem:[#allocation5 + $0x8] sm:$0xff]   ;;  %s1856_s30 = scalar_lea.vmem %s2232_s29, 256  ;;  %p2308_p2 = scmp.ne.s32.totalorder %s2298_s27, 0 }
  0x4c   : > { %581 = vperm.xlu0 %1712, %v576_v3   ;;  %1527 = vmatmul.mubr.msk.bf16.vlgmr.msra.gmra.mxu0 %vm511_vm1, %v1717_v8  ;;  %v1736_v8 = vld [vmem:[#allocation5 + $0x28] sm:$0xff]   ;;  %p1857_p3 = scmp.ne.s32.totalorder %s2232_s29, %s1856_s30  ;;  %s1935_s21 = smov [#allocation8]  }
  0x4d   : > { %1552 = vmatprep.mubr.msk.bf16.mxu0 %vm1933_vm0, %v1932_v1  ;;  %1535 = vmatpush3.bf16.msra.mxu1 %v1720_v10  ;;  %v1738_v10 = vld [vmem:[#allocation5 + $0x18] sm:$0xff]   ;;  %s1860_s19 = sshll.u32 %s1935_s21, 4  ;;  %s1861_s19 = int_to_ptr.vmem [resolvable:$false] %s1860_s19 }
  0x4e   : > { %1536 = vmatprep.subr.bf16.mxu1 %v1932_v1  ;;  %p1858_p4 = pnand %p1857_p3, %p2308_p2  ;;  %s1862_s16 = scalar_lea.vmem %s1861_s19, 512 }
  0x4f   : > { %797 = vperm.xlu1 %1713, %v1437_v31   ;;  %p1863_p8 = scmp.lt.s32.totalorder %s2232_s29, %s1861_s19  ;;  %p1864_p11 = scmp.lt.s32.totalorder %s1862_s16, %s1856_s30 }
  0x50   : > { %p1859_p7 = pneg %p1858_p4 }
  0x51   : > { %1537 = vmatpush3.bf16.msra.mxu1 %v1721_v11  ;;  %p1865_p0 = por %p1864_p11, %p1863_p8 }
  0x52   : > { %1538 = vmatprep.subr.bf16.mxu1 %v1932_v1 }
  0x53   : > { %p1866_p6 = pnand %p1865_p0, %p1859_p7 }
  0x55   : > { %1539 = vmatpush3.bf16.msra.mxu1 %v1722_v12 }
  0x56   : > { %1540 = vmatprep.subr.bf16.mxu1 %v1932_v1 }
  0x59   : > { %1541 = vmatpush3.bf16.msra.mxu1 %v1723_v13 }
  0x5a   : > { %1542 = vmatprep.subr.bf16.mxu1 %v1932_v1 }
  0x5d   : > { %1543 = vmatpush3.bf16.msra.mxu1 %v1724_v14 }
  0x5e   : > { %1544 = vmatprep.subr.bf16.mxu1 %v1932_v1 }
  0x61   : > { %1545 = vmatpush3.bf16.msra.mxu1 %v1725_v15 }
  0x62   : > { %1574 = vmatprep.subr.bf16.mxu1 %v1932_v1 }
  0xc3   : > { %v579_v17 = vpop.permute.xlu0 %578 }
  0xc4   : > { %vm583_vm2 = vcmp.eq.s32.totalorder %v2150_v18, %v579_v17 }
  0xc6   : > { %v795_v45 = vpop.permute.xlu1 %794 }
  0xc7   : > { %v582_v19 = vpop.permute.xlu0 %581  ;;  %vm799_vm5 = vcmp.lt.s32.totalorder %v2150_v18, %v795_v45  ;;  %v1744_v45 = vld [vmem:[#allocation7 + $0x28] sm:$0xff]  }
  0xc8   : > { %vm584_vm3 = vcmp.eq.s32.totalorder %v2150_v18, %v582_v19 }
  0xc9   : > { %vm1432_vm4 = vmpackc.low %vm584_vm3, %vm583_vm2 }
  0xca   : > { %1547 = vmatmul.mubr.msk.bf16.vlgmr.msra.gmra.mxu1 %vm1432_vm4, %v1934_v20  ;;  %v798_v51 = vpop.permute.xlu1 %797  ;;  %v1727_v20 = vld [vmem:[#allocation2 + $0x30] sm:$0xff]  }
  0xcb   : > { %1590 = vmatprep.mubr.msk.bf16.mxu1 %vm1933_vm0, %v1932_v1  ;;  %vm800_vm7 = vcmp.lt.s32.totalorder %v2150_v18, %v798_v51  ;;  %1575 = vmatpush3.bf16.msra.mxu1 %v1734_v6  ;;  %v1726_v18 = vld [vmem:[#allocation2 + $0x38] sm:$0xff]  }
  0xcc   : > { %1576 = vmatprep.subr.bf16.mxu1 %v1932_v1 }
  0xcf   : > { %1577 = vmatpush3.bf16.msra.mxu1 %v1735_v7 }
  0xd0   : > { %1578 = vmatprep.subr.bf16.mxu1 %v1932_v1 }
  0xd3   : > { %1579 = vmatpush3.bf16.msra.mxu1 %v1736_v8 }
  0xd4   : > { %1580 = vmatprep.subr.bf16.mxu1 %v1932_v1 }
  0xd7   : > { %1581 = vmatpush3.bf16.msra.mxu1 %v1737_v9 }
  0xd8   : > { %1582 = vmatprep.subr.bf16.mxu1 %v1932_v1 }
  0xdb   : > { %1583 = vmatpush3.bf16.msra.mxu1 %v1738_v10 }
  0xdc   : > { %1584 = vmatprep.subr.bf16.mxu1 %v1932_v1 }
 0x10c   : > { %v1528_v22 = vpop.f32.mrf.mxu0 }
 0x10d   : > { %v561_v23 = vadd.f32 %v1528_v22, %v1415_v21  ;;  %v1729_v22 = vld [vmem:[#allocation2 + $0x20] sm:$0xff]  }
 0x10e   : > { %v552_v24 = vpop.f32.mrf.mxu0 }
 0x10f   : > { %v553_v25 = vadd.f32 %v1415_v21, %v552_v24  ;;  %1750 = vtanh.f32 %v561_v23  ;;  %v1730_v23 = vld [vmem:[#allocation2 + $0x18] sm:$0xff]   ;;  %v1731_v24 = vld [vmem:[#allocation2 + $0x10] sm:$0xff]  }
 0x110   : > { %v1529_v26 = vpop.f32.mrf.mxu0 }
 0x111   : > { %v564_v27 = vadd.f32 %v1529_v26, %v1415_v21  ;;  %1752 = vtanh.f32 %v553_v25  ;;  %v1732_v25 = vld [vmem:[#allocation2 + $0x8] sm:$0xff]   ;;  %v1733_v26 = vld [vmem:[#allocation2] sm:$0xff]  }
 0x112   : > { %v555_v29 = vpop.f32.mrf.mxu0 }
 0x113   : > { %1754 = vtanh.f32 %v564_v27  ;;  %v556_v30 = vadd.f32 %v1415_v21, %v555_v29  ;;  %v1728_v21 = vld [vmem:[#allocation2 + $0x28] sm:$0xff]   ;;  %v1739_v27 = vld [vmem:[#allocation5 + $0x10] sm:$0xff]   ;;  %v1741_v29 = vld [vmem:[#allocation5] sm:$0xff]  }
 0x114   : > { %1585 = vmatpush3.bf16.msra.mxu1 %v1739_v27 }
 0x115   : > { %1756 = vtanh.f32 %v556_v30  ;;  %1586 = vmatprep.subr.bf16.mxu1 %v1932_v1 }
 0x118   : > { %1587 = vmatpush3.bf16.msra.mxu1 %v1740_v28 }
 0x119   : > { %1588 = vmatprep.subr.bf16.mxu1 %v1932_v1 }
 0x11c   : > { %v1751_v32 = vpop.eup %1750  ;;  %1589 = vmatpush3.bf16.msra.mxu1 %v1741_v29 }
 0x11d   : > { %1614 = vmatprep.subr.bf16.mxu1 %v1932_v1 }
 0x11e   : > { %v1753_v33 = vpop.eup %1752 }
 0x120   : > { %v1755_v34 = vpop.eup %1754 }
 0x121   : > { %v2163_v35 = vpack.c.bf16 %v1755_v34, %v1751_v32 }
 0x122   : > { %v1757_v36 = vpop.eup %1756 }
 0x123   : > { %v571_v37 = vpack.c.bf16 %v1757_v36, %v1753_v33 }
 0x125   : > { %1551 = vmatpush3.bf16.xpose.msra.mxu0 %v571_v37 }
 0x126   : > { %1556 = vmatprep.subr.bf16.mxu0 %v1932_v1 }
 0x18a   : > { %v2166_v38 = vpop.f32.mrf.mxu1 }
 0x18b   : > { %v1471_v39 = vpack.c.bf16 %v2166_v38, %v2166_v38 }
 0x18c   : > { %v1548_v40 = vpop.f32.mrf.mxu1 }
 0x18d   : > { %1553 = vmatmul.mubr.bf16.vlgmr.msra.gmra.mxu0 %v1471_v39  ;;  %v1743_v39 = vld [vmem:[#allocation7 + $0x30] sm:$0xff]  }
 0x18e   : > { %1557 = vmatpush3.bf16.xpose.msra.mxu0 %v2163_v35  ;;  %v2171_v41 = vpop.f32.mrf.mxu1  ;;  %1558 = vmatprep.mubr.msk.bf16.mxu0 %vm1933_vm0, %v1932_v1 }
 0x18f   : > { %v695_v42 = vpack.c.bf16 %v2171_v41, %v2166_v38  ;;  %1562 = vmatprep.subr.bf16.mxu0 %v1932_v1  ;;  %v1472_v44 = vpack.c.bf16 %v2171_v41, %v2171_v41 }
 0x190   : > { %v1549_v43 = vpop.f32.mrf.mxu1 }
 0x195   : > { %1559 = vmatmul.mubr.bf16.vlgmr.msra.gmra.mxu0 %v1472_v44 }
 0x196   : > { %1563 = vmatpush3.bf16.msra.mxu0 %v571_v37  ;;  %1564 = vmatprep.mubr.msk.bf16.mxu0 %vm1933_vm0, %v1932_v1 }
 0x197   : > { %1568 = vmatprep.subr.bf16.mxu0 %v1932_v1 }
 0x24d   : > { %v737_v46 = vpop.f32.mrf.mxu0 }
 0x24e   : > { %v801_v47 = vsel %vm799_vm5, %v737_v46, -1e+30  ;;  %v1745_v46 = vld [vmem:[#allocation7 + $0x20] sm:$0xff]  }
 0x24f   : > { %v1554_v48 = vpop.f32.mrf.mxu0  ;;  %v804_v49 = vsel %vm803_vm6, %v801_v47, -inf }
 0x250   : > { %805 = vmax.xlane.f32.xlu0 %v804_v49  ;;  %v1747_v48 = vld [vmem:[#allocation7 + $0x10] sm:$0xff]   ;;  %v1748_v49 = vld [vmem:[#allocation7 + $0x8] sm:$0xff]  }
 0x251   : > { %v740_v50 = vpop.f32.mrf.mxu0 }
 0x252   : > { %v1749_v50 = vld [vmem:[#allocation7] sm:$0xff]  }
 0x253   : > { %v1555_v52 = vpop.f32.mrf.mxu0 }
 0x255   : > { %v777_v53 = vpop.f32.mrf.mxu0 }
 0x256   : > { %v802_v54 = vsel %vm800_vm7, %v777_v53, -1e+30  ;;  %v1456_v53 = vld [vmem:[%s2287_s8] ss:$0 sm:$0xff] }
 0x257   : > { %v1560_v55 = vpop.f32.mrf.mxu0  ;;  %v807_v56 = vsel %vm803_vm6, %v802_v54, -inf }
 0x258   : > { %808 = vmax.xlane.f32.xlu1 %v807_v56 }
 0x259   : > { %v780_v57 = vpop.f32.mrf.mxu0 }
 0x25b   : > { %v1561_v58 = vpop.f32.mrf.mxu0 }
 0x2d9   : > { %v806_v59 = vpop.xlane.xlu0 %805 }
 0x2da   : > { %v810_v60 = vsub.f32 %v801_v47, %v806_v59  ;;  %v1746_v47 = vld [vmem:[#allocation7 + $0x18] sm:$0xff]  }
 0x2dc   : > { %v812_v61 = vmul.f32 1.442695, %v810_v60 }
 0x2de   : > { %1758 = vpow2.f32 %v812_v61 }
 0x2e1   : > { %v809_v62 = vpop.xlane.xlu1 %808 }
 0x2e2   : > { %v811_v63 = vsub.f32 %v802_v54, %v809_v62 }
 0x2e4   : > { %v814_v0 = vmul.f32 1.442695, %v811_v63 }
 0x2e6   : > { %1760 = vpow2.f32 %v814_v0 }
 0x2eb   : > { %v1759_v2 = vpop.eup %1758 }
 0x2ec   : > { %v816_v3 = vsel %vm803_vm6, %v1759_v2, 0.0 }
 0x2ed   : > { %817 = vadd.xlane.f32.xlu0 %v816_v3 }
 0x2f3   : > { %v1761_v4 = vpop.eup %1760 }
 0x2f4   : > { %v819_v5 = vsel %vm803_vm6, %v1761_v4, 0.0 }
 0x2f5   : > { %820 = vadd.xlane.f32.xlu0 %v819_v5 }
 0x376   : > { %v818_v11 = vpop.xlane.xlu0 %817 }
 0x377   : > { %1762 = vrcp.f32 %v818_v11 }
 0x37e   : > { %v821_v12 = vpop.xlane.xlu0 %820 }
 0x37f   : > { %1764 = vrcp.f32 %v821_v12 }
 0x384   : > { %v1763_v13 = vpop.eup %1762 }
 0x385   : > { %v824_v14 = vmul.f32 %v1763_v13, %v1759_v2 }
 0x387   : > { %v826_v15 = vpack.c.bf16 %v824_v14, %v824_v14 }
 0x389   : > { %1565 = vmatmul.mubr.msk.bf16.vlgmr.msra.gmra.mxu0 %vm803_vm6, %v826_v15 }
 0x38a   : > { %1569 = vmatpush3.bf16.msra.mxu0 %v2163_v35  ;;  %1570 = vmatprep.mubr.msk.bf16.mxu0 %vm1933_vm0, %v1932_v1  ;;  %v1742_v35 = vld [vmem:[#allocation7 + $0x38] sm:$0xff]  }
 0x38b   : > { %1594 = vmatprep.subr.bf16.mxu0 %v1932_v1 }
 0x38c   : > { %v1765_v16 = vpop.eup %1764 }
 0x38d   : > { %v825_v17 = vmul.f32 %v1765_v16, %v1761_v4 }
 0x38f   : > { %v827_v19 = vpack.c.bf16 %v825_v17, %v825_v17 }
 0x391   : > { %1571 = vmatmul.mubr.msk.bf16.vlgmr.msra.gmra.mxu0 %vm803_vm6, %v827_v19 }
 0x392   : > { %1595 = vmatpush3.bf16.msra.mxu0 %v1726_v18  ;;  %1610 = vmatprep.mubr.msk.bf16.mxu0 %vm1933_vm0, %v1932_v1 }
 0x393   : > { %1596 = vmatprep.subr.bf16.mxu0 %v1932_v1 }
 0x396   : > { %1597 = vmatpush3.bf16.msra.mxu0 %v1727_v20 }
 0x397   : > { %1598 = vmatprep.subr.bf16.mxu0 %v1932_v1 }
 0x39a   : > { %1599 = vmatpush3.bf16.msra.mxu0 %v1728_v21 }
 0x39b   : > { %1600 = vmatprep.subr.bf16.mxu0 %v1932_v1 }
 0x39e   : > { %1601 = vmatpush3.bf16.msra.mxu0 %v1729_v22 }
 0x39f   : > { %1602 = vmatprep.subr.bf16.mxu0 %v1932_v1 }
 0x3a2   : > { %1603 = vmatpush3.bf16.msra.mxu0 %v1730_v23 }
 0x3a3   : > { %1604 = vmatprep.subr.bf16.mxu0 %v1932_v1 }
 0x3a6   : > { %1605 = vmatpush3.bf16.msra.mxu0 %v1731_v24 }
 0x3a7   : > { %1606 = vmatprep.subr.bf16.mxu0 %v1932_v1 }
 0x3aa   : > { %1607 = vmatpush3.bf16.msra.mxu0 %v1732_v25 }
 0x3ab   : > { %1608 = vmatprep.subr.bf16.mxu0 %v1932_v1 }
 0x3ae   : > { %1609 = vmatpush3.bf16.msra.mxu0 %v1733_v26 }
 0x3b1   : > { %1611 = vmatmul.mubr.bf16.vlgmr.msra.gmra.mxu0 %v695_v42 }
 0x449   : > { %v865_v30 = vpop.f32.mrf.mxu0 }
 0x44b   : > { %v1566_v31 = vpop.f32.mrf.mxu0 }
 0x44d   : > { %v868_v32 = vpop.f32.mrf.mxu0 }
 0x44f   : > { %v1567_v33 = vpop.f32.mrf.mxu0 }
 0x451   : > { %v908_v34 = vpop.f32.mrf.mxu0 }
 0x452   : > { %v914_v36 = vpack.c.bf16 %v908_v34, %v865_v30 }
 0x453   : > { %v1572_v37 = vpop.f32.mrf.mxu0 }
 0x454   : > { %1591 = vmatmul.mubr.bf16.vlgmr.msra.gmra.mxu1 %v914_v36 }
 0x455   : > { %v911_v38 = vpop.f32.mrf.mxu0  ;;  %1615 = vmatpush3.bf16.msra.mxu1 %v1742_v35  ;;  %1630 = vmatprep.mubr.msk.bf16.mxu1 %vm1933_vm0, %v1932_v1 }
 0x456   : > { %1616 = vmatprep.subr.bf16.mxu1 %v1932_v1 }
 0x457   : > { %v1573_v40 = vpop.f32.mrf.mxu0 }
 0x459   : > { %1617 = vmatpush3.bf16.msra.mxu1 %v1743_v39 }
 0x45a   : > { %1618 = vmatprep.subr.bf16.mxu1 %v1932_v1 }
 0x45d   : > { %1619 = vmatpush3.bf16.msra.mxu1 %v1744_v45 }
 0x45e   : > { %1620 = vmatprep.subr.bf16.mxu1 %v1932_v1 }
 0x461   : > { %1621 = vmatpush3.bf16.msra.mxu1 %v1745_v46 }
 0x462   : > { %1622 = vmatprep.subr.bf16.mxu1 %v1932_v1 }
 0x465   : > { %1623 = vmatpush3.bf16.msra.mxu1 %v1746_v47 }
 0x466   : > { %1624 = vmatprep.subr.bf16.mxu1 %v1932_v1 }
 0x469   : > { %1625 = vmatpush3.bf16.msra.mxu1 %v1747_v48 }
 0x46a   : > { %1626 = vmatprep.subr.bf16.mxu1 %v1932_v1 }
 0x46d   : > { %1627 = vmatpush3.bf16.msra.mxu1 %v1748_v49 }
 0x46e   : > { %1628 = vmatprep.subr.bf16.mxu1 %v1932_v1  ;;  %v1457_v1 = vld [vmem:[%s2289_s10] ss:$0 sm:$0xff] }
 0x471   : > { %v1118_v41 = vpop.f32.mrf.mxu0  ;;  %1629 = vmatpush3.bf16.msra.mxu1 %v1749_v50 }
 0x473   : > { %v1612_v42 = vpop.f32.mrf.mxu0 }
 0x475   : > { %v1121_v43 = vpop.f32.mrf.mxu0 }
 0x477   : > { %v1613_v44 = vpop.f32.mrf.mxu0 }
 0x514   : > { %v1029_v51 = vpop.f32.mrf.mxu1 }
 0x515   : > { %v1119_v52 = vadd.f32 %v1118_v41, %v1029_v51 }
 0x516   : > { %v1592_v54 = vpop.f32.mrf.mxu1 }
 0x517   : > { %v1132_v55 = vadd.f32 %v1456_v53, %v1119_v52 }
 0x518   : > { %v1032_v56 = vpop.f32.mrf.mxu1 }
 0x519   : > { %v1122_v57 = vadd.f32 %v1121_v43, %v1032_v56  ;;  %1766 = vtanh.f32 %v1132_v55 }
 0x51a   : > { %v1593_v58 = vpop.f32.mrf.mxu1 }
 0x51b   : > { %v1133_v59 = vadd.f32 %v1456_v53, %v1122_v57 }
 0x51d   : > { %1768 = vtanh.f32 %v1133_v59 }
 0x526   : > { %v1767_v60 = vpop.eup %1766 }
 0x52a   : > { %v1769_v61 = vpop.eup %1768 }
 0x52b   : > { %v1136_v62 = vpack.c.bf16 %v1769_v61, %v1767_v60 }
 0x52d   : > { %1631 = vmatmul.mubr.bf16.vlgmr.msra.gmra.mxu1 %v1136_v62 }
 0x5ed   : > { %v1242_v63 = vpop.f32.mrf.mxu1 }
 0x5ee   : > { %v1243_v0 = vadd.f32 %v1457_v1, %v1242_v63 }
 0x5ef   : > { %v1632_v2 = vpop.f32.mrf.mxu1 }
 0x5f0   : > { %1249 = vmax.xlane.f32.xlu1 %v1243_v0 }
 0x5f1   : > { %v1245_v3 = vpop.f32.mrf.mxu1 }
 0x5f2   : > { %v1246_v4 = vadd.f32 %v1457_v1, %v1245_v3 }
 0x5f3   : > { %v1633_v5 = vpop.f32.mrf.mxu1 }
 0x5f4   : > { %1251 = vmax.xlane.f32.xlu0 %v1246_v4 }
 0x679   : > { %v1250_v6 = vpop.xlane.xlu1 %1249 }
 0x67a   : > { %v1253_v7 = vsub.f32 %v1243_v0, %v1250_v6 }
 0x67c   : > { %v1255_v8 = vmul.f32 1.442695, %v1253_v7 }
 0x67d   : > { %v1252_v9 = vpop.xlane.xlu0 %1251 }
 0x67e   : > { %1770 = vpow2.f32 %v1255_v8  ;;  %v1254_v10 = vsub.f32 %v1246_v4, %v1252_v9 }
 0x680   : > { %v1257_v11 = vmul.f32 1.442695, %v1254_v10 }
 0x682   : > { %1772 = vpow2.f32 %v1257_v11 }
 0x68b   : > { %v1771_v12 = vpop.eup %1770 }
 0x68c   : > { %1259 = vadd.xlane.f32.xlu1 %v1771_v12 }
 0x68f   : > { %v1773_v13 = vpop.eup %1772 }
 0x690   : > { %1261 = vadd.xlane.f32.xlu0 %v1773_v13 }
 0x715   : > { %v1260_v14 = vpop.xlane.xlu1 %1259 }
 0x716   : > { %1774 = vlog2.f32 %v1260_v14 }
 0x719   : > { %v1262_v15 = vpop.xlane.xlu0 %1261 }
 0x71a   : > { %1776 = vlog2.f32 %v1262_v15 }
 0x723   : > { %v1775_v16 = vpop.eup %1774 }
 0x724   : > { %v1264_v17 = vmul.f32 0.6931472, %v1775_v16 }
 0x726   : > { %v1267_v18 = vsub.f32 %v1253_v7, %v1264_v17 }
 0x727   : > { %v1777_v19 = vpop.eup %1776 }
 0x728   : > { %1269 = vst [vmem:[%s454_s13] sm:$0xff] %v1267_v18  ;;  %v1266_v20 = vmul.f32 0.6931472, %v1777_v19 }
 0x72a   : > { %v1268_v21 = vsub.f32 %v1254_v10, %v1266_v20 }
 0x72c   : > { %1270 = vst [vmem:[%s454_s13 + $0x8] sm:$0xff] %v1268_v21 }
 0x72d   : > { %1869 = shalt.err (!%p1866_p6)
}
 0x72e   : > { %s1870_s24 = scalar_lea.hbm %s2237_s22, 256  ;;  %s1874_s14 = scalar_lea.hbm %s2290_s11, 512 }
 0x72f   : > { %p1871_p9 = scmp.ne.s32.totalorder %s2237_s22, %s1870_s24  ;;  %p1875_p5 = scmp.lt.s32.totalorder %s2237_s22, %s2290_s11 }
 0x730   : > { %p1876_p12 = scmp.lt.s32.totalorder %s1874_s14, %s1870_s24 }
 0x731   : > { %p1872_p13 = pnand %p1871_p9, %p2308_p2 }
 0x732   : > { %p1877_p10 = por %p1876_p12, %p1875_p5 }
 0x733   : > { %p1873_p1 = pneg %p1872_p13 }
 0x735   : > { %p1878_p3 = pnand %p1877_p10, %p1873_p1 }
 0x737   : > { %1881 = shalt.err (!%p1878_p3)
}
 0x738   : > { %s1936_s6 = smov 128   ;;  %s1937_s7 = smov 8  }
 0x739   : > { %1646 = dma.vmem_to_hbm [thread:$0]  (%p2308_p2), %s2232_s29, 256, %s2237_s22, %s2239_s25, %s1936_s6, %s1936_s6, %s1937_s7  }
 0x73a PF: > { %p1668_p4 = scmp.ge.s32.totalorder %s1924_s20, 2  ;;  %s1300_s30 = sand.u32 1, %s1912_s17  }
 0x73b   : > { %p2309_p7 = scmp.ne.s32.totalorder %s2299_s28, 0  ;;  %s1301_s21 = scalar_lea.sflag [#allocation4], %s1300_s30 }
 0x73d   : > { %p1659_p8 = pnand %p1668_p4, %p2309_p7 }
 0x73f   : > { %p1660_p11 = pneg %p1659_p8 }
 0x741   : > { %1907 = dma.done.wait (%p1660_p11), %s1301_s21, 256  }
 0x742   : > { %1909 = vsyncadd (%p1660_p11), %s1301_s21, 4294967040  ;;  %s2310_s19 = sld [smem:[#allocation12_spill]]  ;;  %p23_p0 = scmp.ge.s32.totalorder %s2023_s23, 4  }
 0x743   : > { %s2311_s16 = sld [smem:[#allocation13_spill]]  ;;  %s2312_s17 = smov %s1916_s18 }
 0x744   : > { %s2315_s20 = smov %s2023_s23 }
 0x745   :  { %25 = sbr.rel (!%p23_p0) target bundleno = 8 (0x8), region = 118 }
 0x748   : > { %s2313_s18 = smov %s2310_s19 }
 0x749   : > { %s2314_s19 = smov %s2311_s16 }
 0x74a   :  { %1306 = vsyncpa [#allocation3], 1 }
 0x74b   :  { %1308 = vsyncpa [#allocation3 + $0x1], 1 }
 0x74c   :  { %1309 = vsyncpa [#allocation6], 1 }
 0x74d   :  { %1310 = vsyncpa [#allocation4], 1 }
 0x74e   :  { %1312 = vsyncpa [#allocation4 + $0x1], 1 }

</bundles_post_ra>
